<compile_context>
chip_gen: v6e
topology: v6e:2x2x1
jax: 0.10.0
libtpu: 0.0.40
codegen_flags: <defaults>
</compile_context>

<pallas_src>
import math
import numpy as np
import jax
import jax.numpy as jnp
from jax.experimental import pallas as pl
from jax.experimental.pallas import tpu as pltpu


# ----------------------------- small helpers --------------------------------

def round_up(x, m):
    return ((x + m - 1) // m) * m


def sincos_table(n, d_model, normalize=False):
    """FixedEmbedding / PositionalEncoding table (matches the torch code)."""
    pos = np.arange(n, dtype=np.float32).reshape(-1, 1)
    div = np.exp(np.arange(0, d_model, 2, dtype=np.float32)
                 * -(math.log(10000.0) / d_model))
    tab = np.zeros((n, d_model), dtype=np.float32)
    tab[:, 0::2] = np.sin(pos * div)
    tab[:, 1::2] = np.cos(pos * div)
    if normalize:
        tab = tab - tab.mean()
        tab = tab / (tab.std(ddof=1) * 10.0)   # torch.std is unbiased
    return jnp.asarray(tab, jnp.float32)


def _vmem_step_bytes(tl, kc_pad, d_pad, n_tab):
    """Double-buffered per-step VMEM estimate (ids block is lane-padded)."""
    b = 0
    b += 2 * tl * kc_pad * 2      # x2col bf16
    b += 2 * tl * 128 * 4         # ids int32 (4 lanes padded to 128)
    b += 2 * tl * d_pad * 4       # positional f32
    b += 2 * kc_pad * d_pad * 2   # conv weight bf16
    b += 2 * n_tab * d_pad * 2    # merged table bf16
    b += 2 * tl * d_pad * 4       # output f32
    return b


# -------------------------------- the kernel --------------------------------

def data_embedding_kernel(x2col_ref, ids_ref, pos_ref, w_ref, tab_ref, o_ref):
    # x2col_ref: [TL, Kc_pad]   bf16   (im2col of the circular conv)
    # ids_ref:   [TL, 4]        int32  (hour/wday/day/month ids, pre-offset)
    # pos_ref:   [TL, d_pad]    f32    (positional encoding tile, batch-shared)
    # w_ref:     [Kc_pad, d_pad] bf16  (flattened conv weight)
    # tab_ref:   [128, d_pad]   bf16   (merged fixed-embedding table)
    # o_ref:     [TL, d_pad]    f32
    tl = o_ref.shape[0]
    n_tab = tab_ref.shape[0]

    # accumulator initialized from the positional tile (no zeros + extra add)
    acc = pos_ref[...]

    # value embedding: one im2col MXU matmul (bf16 in, f32 accumulate)
    acc = acc + jnp.dot(x2col_ref[...], w_ref[...],
                        preferred_element_type=jnp.float32)

    # temporal embedding: single multi-hot (4 disjoint one-hots, OR'd) matmul
    ids = ids_ref[...]                                          # [TL, 4] i32
    iota = jax.lax.broadcasted_iota(jnp.int32, (tl, n_tab), 1)  # [TL, 128]
    mh = ((ids[:, 0:1] == iota) | (ids[:, 1:2] == iota)
          | (ids[:, 2:3] == iota) | (ids[:, 3:4] == iota)).astype(jnp.bfloat16)
    acc = acc + jnp.dot(mh, tab_ref[...], preferred_element_type=jnp.float32)

    o_ref[...] = acc


# -------------------------------- the wrapper --------------------------------

def data_embedding(x, x_mark, conv_w, hour_tab, wday_tab, day_tab,
                   mon_tab, pos_tab, *, tl_max=1024):
    """x: [B, L, c_in] f32, x_mark: [B, L, 4] i32 (month, day, weekday, hour),
    conv_w: [d_model, c_in, 3] (torch Conv1d layout)."""
    B, L, c_in = x.shape
    d_model = conv_w.shape[0]

    # --- im2col for circular Conv1d(k=3, pad=1, padding_mode='circular') ---
    x_pad = jnp.pad(x, ((0, 0), (1, 1), (0, 0)), mode="wrap")
    x2col = jnp.concatenate([x_pad[:, k:k + L, :] for k in range(3)], axis=-1)
    x2col = x2col.astype(jnp.bfloat16)                           # [B, L, 3*c_in]
    w_flat = jnp.transpose(conv_w, (2, 1, 0)).reshape(3 * c_in, d_model)
    w_flat = w_flat.astype(jnp.bfloat16)

    # --- merged fixed-embedding table (hour|weekday|day|month), bf16, 128 rows
    n_tab = 128
    tab = jnp.concatenate([hour_tab, wday_tab, day_tab, mon_tab], axis=0)  # 76
    tab = jnp.pad(tab, ((0, n_tab - tab.shape[0]), (0, 0))).astype(jnp.bfloat16)
    offs = jnp.array([0, 24, 24 + 7, 24 + 7 + 32], jnp.int32)
    # x_mark columns are (month, day, weekday, hour) -> reorder + offset
    ids = jnp.stack([x_mark[..., 3], x_mark[..., 2],
                     x_mark[..., 1], x_mark[..., 0]], axis=-1)
    ids = ids.astype(jnp.int32) + offs                           # [B, L, 4]

    # --- tiling choices (lane-dense d, VMEM-budgeted row tile) ---
    d_pad = d_model if d_model % 128 == 0 else round_up(d_model, 128)
    kc = 3 * c_in
    kc_pad = round_up(kc, 16)                 # bf16 sublane-aligned contraction
    tl = min(tl_max, round_up(L, 16))         # 16-row multiple (bf16 sublanes)
    while _vmem_step_bytes(tl, kc_pad, d_pad, n_tab) > (40 << 20) and tl > 16:
        tl //= 2
    tl = max(16, round_up(tl, 16))
    L_pad = round_up(L, tl)

    # --- pad operands (pos is (L_pad, d_pad): NOT broadcast over batch) ---
    x2col_p = jnp.pad(x2col, ((0, 0), (0, L_pad - L), (0, kc_pad - kc)))
    ids_p = jnp.pad(ids, ((0, 0), (0, L_pad - L), (0, 0)))
    pos_p = jnp.pad(pos_tab[:L], ((0, L_pad - L), (0, d_pad - d_model)))
    w_p = jnp.pad(w_flat, ((0, kc_pad - kc), (0, d_pad - d_model)))
    tab_p = jnp.pad(tab, ((0, 0), (0, d_pad - d_model)))

    n_l_tiles = L_pad // tl
    grid = (n_l_tiles, B)                     # batch innermost -> pos reused

    bytes_accessed = int(x2col_p.size) * 2 + int(ids_p.size) * 4 \
        + int(pos_p.size) * 4 + int(w_p.size) * 2 + int(tab_p.size) * 2 \
        + B * L_pad * d_pad * 4
    vmem_limit = int(min(48 << 20,
                         max(16 << 20,
                             _vmem_step_bytes(tl, kc_pad, d_pad, n_tab)
                             + (4 << 20))))

    out = pl.pallas_call(
        data_embedding_kernel,
        out_shape=jax.ShapeDtypeStruct((B, L_pad, d_pad), jnp.float32),
        grid=grid,
        in_specs=[
            pl.BlockSpec((None, tl, kc_pad), lambda j, b: (b, j, 0)),  # im2col
            pl.BlockSpec((None, tl, 4), lambda j, b: (b, j, 0)),       # ids
            pl.BlockSpec((tl, d_pad), lambda j, b: (j, 0)),            # pos
            pl.BlockSpec((kc_pad, d_pad), lambda j, b: (0, 0)),        # weight
            pl.BlockSpec((n_tab, d_pad), lambda j, b: (0, 0)),         # table
        ],
        out_specs=pl.BlockSpec((None, tl, d_pad), lambda j, b: (b, j, 0)),
        compiler_params=pltpu.CompilerParams(
            dimension_semantics=("parallel", "parallel"),
            vmem_limit_bytes=vmem_limit),
        cost_estimate=pl.CostEstimate(
            flops=2 * B * L_pad * (kc_pad + n_tab) * d_pad,
            transcendentals=0,
            bytes_accessed=bytes_accessed),
    )(x2col_p, ids_p, pos_p, w_p, tab_p)

    if L_pad == L and d_pad == d_model:
        return out
    return out[:, :L, :d_model]


# ---------------------------------- main -------------------------------------

if __name__ == "__main__":
    B, L, c_in, d_model = 2, 8, 4, 32

    key = jax.random.PRNGKey(0)
    kx, kw, km, kd, kwd, kh = jax.random.split(key, 6)

    # inputs
    x = jax.random.normal(kx, (B, L, c_in), dtype=jnp.float32)
    month = jax.random.randint(km, (B, L, 1), 0, 13)
    day = jax.random.randint(kd, (B, L, 1), 0, 32)
    weekday = jax.random.randint(kwd, (B, L, 1), 0, 7)
    hour = jax.random.randint(kh, (B, L, 1), 0, 24)
    x_mark = jnp.concatenate([month, day, weekday, hour], axis=-1).astype(jnp.int32)

    # Conv1d weight [d_model, c_in, 3], kaiming_normal_(fan_in, leaky_relu)
    fan_in = c_in * 3
    gain = math.sqrt(2.0 / (1.0 + 0.01 ** 2))
    std = gain / math.sqrt(fan_in)
    conv_w = jax.random.normal(kw, (d_model, c_in, 3), dtype=jnp.float32) * std

    # fixed embedding tables (FixedEmbedding, not normalized)
    hour_tab = sincos_table(24, d_model)
    wday_tab = sincos_table(7, d_model)
    day_tab = sincos_table(32, d_model)
    mon_tab = sincos_table(13, d_model)

    # positional encoding (q_len=5000, normalize=True)
    pos_tab = sincos_table(5000, d_model, normalize=True)

    out = data_embedding(x, x_mark, conv_w, hour_tab, wday_tab, day_tab,
                         mon_tab, pos_tab)
    out = jax.block_until_ready(out)

    # ---------------- pure numpy reference (for sanity) ----------------
    # Conv operands and the fixed-embedding table are stored in bf16 inside the
    # kernel, so the reference uses the bf16-rounded values (pos stays f32).
    def bf(a):
        return np.asarray(jnp.asarray(a).astype(jnp.bfloat16).astype(jnp.float32))

    x_bf, w_bf = bf(x), bf(conv_w)
    hour_bf, wday_bf, day_bf, mon_bf = bf(hour_tab), bf(wday_tab), bf(day_tab), bf(mon_tab)

    xp = np.pad(x_bf, ((0, 0), (1, 1), (0, 0)), mode="wrap")
    ref = np.zeros((B, L, d_model), dtype=np.float32)
    for k in range(3):
        ref += xp[:, k:k + L, :] @ w_bf[:, :, k].T
    xm_np = np.asarray(x_mark)
    ref += hour_bf[xm_np[:, :, 3]]
    ref += wday_bf[xm_np[:, :, 2]]
    ref += day_bf[xm_np[:, :, 1]]
    ref += mon_bf[xm_np[:, :, 0]]
    ref += np.asarray(pos_tab)[:L][None]

    np.testing.assert_allclose(np.asarray(out), ref, rtol=1e-3, atol=1e-3)
    print("KERNEL_OK")
</pallas_src>

<mosaic_0001>
module attributes {stable_mosaic.version = 11 : i64} {
  func.func @data_embedding_kernel(%arg0: i32, %arg1: i32, %arg2: memref<1x16x16xbf16, #tpu.memory_space<vmem>>, %arg3: memref<1x16x4xi32, #tpu.memory_space<vmem>>, %arg4: memref<16x128xf32, #tpu.memory_space<vmem>>, %arg5: memref<16x128xbf16, #tpu.memory_space<vmem>>, %arg6: memref<128x128xbf16, #tpu.memory_space<vmem>>, %arg7: memref<1x16x128xf32, #tpu.memory_space<vmem>>) attributes {dimension_semantics = [#tpu.dimension_semantics<parallel>, #tpu.dimension_semantics<parallel>], iteration_bounds = array<i64: 1, 2>, scalar_prefetch = 0 : i64, scratch_operands = 0 : i64, tpu.core_type = #tpu.core_type<tc>, window_params = [{transform_indices = @transform_0, window_bounds = array<i64: 1, 16, 16>}, {transform_indices = @transform_1, window_bounds = array<i64: 1, 16, 4>}, {transform_indices = @transform_2, window_bounds = array<i64: 16, 128>}, {pipeline_mode = #tpu.pipeline_mode<synchronous>, transform_indices = @transform_3, window_bounds = array<i64: 16, 128>}, {pipeline_mode = #tpu.pipeline_mode<synchronous>, transform_indices = @transform_4, window_bounds = array<i64: 128, 128>}, {transform_indices = @transform_5, window_bounds = array<i64: 1, 16, 128>}]} {
    %c0 = arith.constant 0 : index
    %c0_0 = arith.constant 0 : index
    %0 = vector.load %arg4[%c0, %c0_0] : memref<16x128xf32, #tpu.memory_space<vmem>>, vector<16x128xf32>
    %c0_1 = arith.constant 0 : index
    %c0_2 = arith.constant 0 : index
    %c0_3 = arith.constant 0 : index
    %1 = vector.load %arg2[%c0_1, %c0_2, %c0_3] : memref<1x16x16xbf16, #tpu.memory_space<vmem>>, vector<1x16x16xbf16>
    %2 = vector.shape_cast %1 : vector<1x16x16xbf16> to vector<16x16xbf16>
    %c0_4 = arith.constant 0 : index
    %c0_5 = arith.constant 0 : index
    %3 = vector.load %arg5[%c0_4, %c0_5] : memref<16x128xbf16, #tpu.memory_space<vmem>>, vector<16x128xbf16>
    %cst = arith.constant dense<0.000000e+00> : vector<16x128xf32>
    %4 = tpu.matmul %2, %3, %cst {dimension_numbers = #tpu.dot_dimension_numbers<[1], [0], [0], [1], [0, 0, 1, 1], [], []>} : vector<16x16xbf16>, vector<16x128xbf16>, vector<16x128xf32> -> vector<16x128xf32>
    %5 = arith.addf %0, %4 : vector<16x128xf32>
    %c0_6 = arith.constant 0 : index
    %c0_7 = arith.constant 0 : index
    %c0_8 = arith.constant 0 : index
    %6 = vector.load %arg3[%c0_6, %c0_7, %c0_8] : memref<1x16x4xi32, #tpu.memory_space<vmem>>, vector<1x16x4xi32>
    %7 = vector.shape_cast %6 : vector<1x16x4xi32> to vector<16x4xi32>
    %8 = tpu.iota {dimensions = array<i32: 1>} : vector<16x128xi32>
    %9 = vector.extract_strided_slice %7 {offsets = [0, 0], sizes = [16, 1], strides = [1, 1]} : vector<16x4xi32> to vector<16x1xi32>
    %10 = vector.broadcast %9 : vector<16x1xi32> to vector<16x128xi32>
    %11 = arith.cmpi eq, %10, %8 : vector<16x128xi32>
    %12 = vector.extract_strided_slice %7 {offsets = [0, 1], sizes = [16, 1], strides = [1, 1]} : vector<16x4xi32> to vector<16x1xi32>
    %13 = vector.broadcast %12 : vector<16x1xi32> to vector<16x128xi32>
    %14 = arith.cmpi eq, %13, %8 : vector<16x128xi32>
    %15 = arith.ori %11, %14 : vector<16x128xi1>
    %16 = vector.extract_strided_slice %7 {offsets = [0, 2], sizes = [16, 1], strides = [1, 1]} : vector<16x4xi32> to vector<16x1xi32>
    %17 = vector.broadcast %16 : vector<16x1xi32> to vector<16x128xi32>
    %18 = arith.cmpi eq, %17, %8 : vector<16x128xi32>
    %19 = arith.ori %15, %18 : vector<16x128xi1>
    %20 = vector.extract_strided_slice %7 {offsets = [0, 3], sizes = [16, 1], strides = [1, 1]} : vector<16x4xi32> to vector<16x1xi32>
    %21 = vector.broadcast %20 : vector<16x1xi32> to vector<16x128xi32>
    %22 = arith.cmpi eq, %21, %8 : vector<16x128xi32>
    %23 = arith.ori %19, %22 : vector<16x128xi1>
    %24 = arith.extui %23 : vector<16x128xi1> to vector<16x128xi32>
    %25 = arith.sitofp %24 : vector<16x128xi32> to vector<16x128xf32>
    %26 = arith.truncf %25 : vector<16x128xf32> to vector<16x128xbf16>
    %c0_9 = arith.constant 0 : index
    %c0_10 = arith.constant 0 : index
    %27 = vector.load %arg6[%c0_9, %c0_10] : memref<128x128xbf16, #tpu.memory_space<vmem>>, vector<128x128xbf16>
    %cst_11 = arith.constant dense<0.000000e+00> : vector<16x128xf32>
    %28 = tpu.matmul %26, %27, %cst_11 {dimension_numbers = #tpu.dot_dimension_numbers<[1], [0], [0], [1], [0, 0, 1, 1], [], []>} : vector<16x128xbf16>, vector<128x128xbf16>, vector<16x128xf32> -> vector<16x128xf32>
    %29 = arith.addf %5, %28 : vector<16x128xf32>
    %c0_12 = arith.constant 0 : index
    %c0_13 = arith.constant 0 : index
    %c0_14 = arith.constant 0 : index
    %30 = vector.load %arg7[%c0_12, %c0_13, %c0_14] : memref<1x16x128xf32, #tpu.memory_space<vmem>>, vector<1x16x128xf32>
    %31 = vector.shape_cast %30 : vector<1x16x128xf32> to vector<16x128xf32>
    %32 = vector.shape_cast %29 : vector<16x128xf32> to vector<1x16x128xf32>
    tpu.vector_store %arg7[%c0_12, %c0_13, %c0_14], %32 {strides = array<i32>} : memref<1x16x128xf32, #tpu.memory_space<vmem>>, vector<1x16x128xf32>,
    return
  }
  func.func @transform_0(%arg0: i32, %arg1: i32) -> (i32, i32, i32) {
    %c0_i32 = arith.constant 0 : i32
    %c0_i32_0 = arith.constant 0 : i32
    return %arg1, %arg0, %c0_i32 : i32, i32, i32
  }
  func.func @transform_1(%arg0: i32, %arg1: i32) -> (i32, i32, i32) {
    %c0_i32 = arith.constant 0 : i32
    %c0_i32_0 = arith.constant 0 : i32
    return %arg1, %arg0, %c0_i32 : i32, i32, i32
  }
  func.func @transform_2(%arg0: i32, %arg1: i32) -> (i32, i32) {
    %c0_i32 = arith.constant 0 : i32
    %c0_i32_0 = arith.constant 0 : i32
    return %arg0, %c0_i32 : i32, i32
  }
  func.func @transform_3(%arg0: i32, %arg1: i32) -> (i32, i32) {
    %c0_i32 = arith.constant 0 : i32
    %c0_i32_0 = arith.constant 0 : i32
    %c0_i32_1 = arith.constant 0 : i32
    return %c0_i32, %c0_i32_0 : i32, i32
  }
  func.func @transform_4(%arg0: i32, %arg1: i32) -> (i32, i32) {
    %c0_i32 = arith.constant 0 : i32
    %c0_i32_0 = arith.constant 0 : i32
    %c0_i32_1 = arith.constant 0 : i32
    return %c0_i32, %c0_i32_0 : i32, i32
  }
  func.func @transform_5(%arg0: i32, %arg1: i32) -> (i32, i32, i32) {
    %c0_i32 = arith.constant 0 : i32
    %c0_i32_0 = arith.constant 0 : i32
    return %arg1, %arg0, %c0_i32 : i32, i32, i32
  }
}

</mosaic_0001>

<bundles_post_ra>
// kernel: tpu_custom_call.1
= control target key start
LH: loop header
LB: loop body
LE: loop exit
PB: predicated region body
PF: predicated region fallthrough
CT: control target
= control target key end

     0   :  { %10 = vsyncpa [#allocation3], 0  ;;  %s1152_s0 = inlined_call_operand.vmem [shape: bf16[2,16,16], index: 0, kind: input, shape index: {}]   ;;  %s1153_s1 = inlined_call_operand.vmem [shape: s32[2,16,4], index: 1, kind: input, shape index: {}]   ;;  %s1154_s2 = inlined_call_operand.vmem [shape: f32[16,128], index: 2, kind: input, shape index: {}]   ;;  %s1155_s3 = inlined_call_operand.vmem [shape: bf16[16,128], index: 3, kind: input, shape index: {}]   ;;  %s1156_s4 = inlined_call_operand.hbm [shape: bf16[128,128], index: 4, kind: input, shape index: {}]   ;;  %s1157_s5 = inlined_call_operand.hbm [shape: f32[2,16,128], index: 5, kind: output, shape index: {}]  }
   0x1   :  { %11 = vsyncpa [#allocation4], 0 }
   0x2   :  { %13 = vsyncpa [#allocation4 + $0x1], 0  ;;  %s1005_s18 = smov 0   ;;  %s1007_s19 = smov 0  }
   0x3   :  { %s1009_s20 = smov 0   ;;  %s1011_s21 = smov 0  }
   0x4   :  { %s1013_s22 = smov 0   ;;  %s1015_s23 = smov 0  }
   0x5 LB: > { %s688_s24 = sadd.s32 4294967295, %s960_s23   ;;  %s689_s25 = sadd.s32 4294967294, %s960_s23   ;;  %s960_s23 = sphi %s1015_s23, %s19_s23   ;;  %s956_s22 = sphi %s1013_s22, %s1166_s22   ;;  %s952_s21 = sphi %s1011_s21, %s1165_s21   ;;  %s948_s20 = sphi %s1009_s20, %s1164_s20   ;;  %s944_s19 = sphi %s1007_s19, %s1163_s19   ;;  %s940_s18 = sphi %s1005_s18, %s1162_s18  }
   0x6   : > { %s28_s26 = sadd.s32 1, %s956_s22  ;;  %s164_s27 = sadd.s32 1, %s948_s20 }
   0x7   : > { %p29_p0 = scmp.ge.s32.totalorder %s28_s26, 2  ;;  %p174_p1 = scmp.ne.s32.totalorder %s948_s20, %s944_s19 }
   0x8   : > { %p175_p2 = scmp.eq.s32.totalorder %s688_s24, 1  ;;  %p180_p3 = scmp.ne.s32.totalorder %s944_s19, %s940_s18 }
   0x9   : > { %s1168_s26 = smov (%p29_p0, %s28_s26), 0  ;;  %p181_p5 = scmp.eq.s32.totalorder %s689_s25, 1 }
   0xa   : > { %p1045_p4 = por %p175_p2, %p174_p1  ;;  %s159_s29 = ssub.s32 %s956_s22, %s1168_s26 }
   0xb   : > { %p690_p6 = scmp.ge.s32.totalorder %s960_s23, 1  ;;  %p162_p7 = scmp.eq.s32.totalorder %s159_s29, 0 }
   0xc   : > { %p1052_p8 = por %p181_p5, %p180_p3  ;;  %p188_p9 = scmp.lt.s32.totalorder %s960_s23, 3 }
   0xd   : > { %s1058_s6 = scalar_select %p162_p7, %s948_s20, %s164_s27  }
   0xe   : > { %p1060_p10 = pnand %p690_p6, %p188_p9  ;;  %p1064_p11 = scmp.eq.s32.totalorder %s688_s24, 0 }
   0xf   : > { %s962_s9 = smov [#allocation2]  }
  0x10   : > { %p767_p12 = pneg %p1060_p10  ;;  %s212_s10 = sshll.u32 %s962_s9, 4  ;;  %s213_s10 = int_to_ptr.vmem [resolvable:$true] %s212_s10 }
  0x11   : > { %s865_s11 = scalar_lea.vmem %s213_s10, 1024  ;;  %p873_p5 = scmp.lt.s32.totalorder %s213_s10, %s213_s10 }
  0x12   : > { %p768_p13 = pnand %p1064_p11, %p767_p12  ;;  %p866_p1 = scmp.ne.s32.totalorder %s213_s10, %s865_s11 }
  0x13   : > { %p874_p6 = scmp.lt.s32.totalorder %s865_s11, %s865_s11 }
  0x14   : > { %p856_p0 = pneg %p768_p13 }
  0x15   : > { %p875_p7 = por %p874_p6, %p873_p5 }
  0x16   : > { %p868_p2 = pnand %p866_p1, %p856_p0 }
  0x18   : > { %p869_p3 = pneg %p868_p2 }
  0x1a   : > { %p876_p9 = pnand %p875_p7, %p869_p3 }
  0x1c   : > { %879 = shalt.err (!%p876_p9)
}
  0x1d   : > { %s963_s12 = smov 64   ;;  %s964_s13 = smov 4  }
  0x1e   : > { %770 = dma.hbm_to_vmem [thread:$0]  (!%p768_p13), %s1156_s4, 1024, %s213_s10, [#allocation3], %s963_s12, %s963_s12, %s964_s13  }
  0x1f   : > { %254 = sbr.rel (%p1060_p10) target bundleno = 399 (0x18f), region = 40 }
  0x24   : > { %931 = dma.done.wait (%p1064_p11), [#allocation3], 1024  }
  0x25   : > { %933 = vsyncadd (%p1064_p11), [#allocation3], 4294966272  ;;  %p301_p12 = scmp.lt.s32.totalorder %s952_s21, 1  ;;  %v965_v0 = vmov 1   ;;  %v966_v1 = vmov 0   ;;  %v967_v2 = vmov 0.0   ;;  %v394_v19 = vlaneseq }
  0x26   : > { %839 = vset.pattern.permute.xlu1 %v965_v0  ;;  %838 = vset.pattern.permute.xlu0 %v966_v1  ;;  %v844_v4 = vld [vmem:[#allocation2 + $0x38] sm:$0xff]   ;;  %v845_v6 = vld [vmem:[#allocation2 + $0x30] sm:$0xff]   ;;  %vm968_vm0 = vmmov 0   ;;  %v849_v7 = vld [vmem:[%s1155_s3] sm:$0xff]   ;;  %vm345_vm1 = vcmask 130048   ;;  %v969_v10 = vmov 2  }
  0x27   : > { %s302_s16 = scalar_select %p301_p12, %s952_s21, 1  ;;  %741 = vmatprep.subr.bf16.mxu1 %v967_v2  ;;  %735 = vmatprep.subr.bf16.mxu0 %v967_v2  ;;  %v846_v8 = vld [vmem:[#allocation2 + $0x28] sm:$0xff]   ;;  %v847_v11 = vld [vmem:[#allocation2 + $0x20] sm:$0xff]   ;;  %v970_v12 = vmov 3   ;;  %v848_v13 = vld [vmem:[#allocation2 + $0x18] sm:$0xff]   ;;  %v395_v22 = vand.u32 127, %v394_v19 }
  0x28   : > { %742 = vmatpush3.bf16.msra.mxu1 %v844_v4  ;;  %737 = vmatprep.mubr.msk.bf16.mxu0 %vm968_vm0, %v967_v2  ;;  %v850_v14 = vld [vmem:[#allocation2 + $0x10] sm:$0xff]   ;;  %v852_v15 = vld [vmem:[#allocation2 + $0x8] sm:$0xff]   ;;  %v853_v16 = vld [vmem:[#allocation2] sm:$0xff]   ;;  %v971_v27 = vmov 1.0|1.0   ;;  %s297_s14 = sand.u32 1, %s944_s19  }
  0x29   : > { %s722_s17 = sshll.u32 %s302_s16, 4  ;;  %s721_s29 = sshll.u32 %s302_s16, 3  ;;  %743 = vmatprep.subr.bf16.mxu1 %v967_v2  ;;  %757 = vmatprep.mubr.msk.bf16.mxu1 %vm968_vm0, %v967_v2  ;;  %v328_v32 = vld [vmem:[%s1154_s2] sm:$0xff]  ;;  %v329_v34 = vld [vmem:[%s1154_s2 + $0x8] sm:$0xff] }
  0x2a   : > { %s318_s27 = scalar_lea.vmem %s1153_s1, %s722_s17  ;;  %s308_s9 = scalar_lea.vmem %s1152_s0, %s721_s29  ;;  %736 = vmatpush3.bf16.msra.mxu0 %v849_v7 }
  0x2b   : > { %v392_v3 = vld [vmem:[%s318_s27] sm:$0xff]  ;;  %v393_v5 = vld [vmem:[%s318_s27 + $0x8] sm:$0xff]  ;;  %s696_s15 = sshll.u32 %s297_s14, 4  ;;  %s723_s27 = sshll.u32 %s952_s21, 8 }
  0x2c   : > { %405 = vperm.xlu1 %839, %v392_v3   ;;  %397 = vperm.xlu0 %838, %v392_v3   ;;  %v851_v9 = vld [vmem:[%s308_s9] sm:$0xff]   ;;  %s299_s24 = scalar_lea.vmem [#allocation5], %s696_s15  ;;  %s1105_s8 = scalar_lea.hbm %s1157_s5, %s723_s27 }
  0x2d   : > { %744 = vmatpush3.bf16.msra.mxu1 %v845_v6  ;;  %738 = vmatmul.mubr.msk.bf16.vlgmr.msra.gmra.mxu0 %vm345_vm1, %v851_v9  ;;  %s564_s25 = sshll.u32 %s299_s24, 4  ;;  %s1107_s9 = scalar_lea.sflag [#allocation4], %s297_s14  ;;  %s1100_s25 = int_to_ptr.vmem [resolvable:$true] %s564_s25 }
  0x2e   : > { %745 = vmatprep.subr.bf16.mxu1 %v967_v2  ;;  %s880_s21 = scalar_lea.vmem %s1100_s25, 256  ;;  %s972_s10 = smov [#allocation5]  }
  0x2f   : > { %p881_p10 = scmp.ne.s32.totalorder %s1100_s25, %s880_s21  ;;  %s884_s11 = sshll.u32 %s972_s10, 4  ;;  %s885_s11 = int_to_ptr.vmem [resolvable:$false] %s884_s11 }
  0x30   : > { %408 = vperm.xlu1 %839, %v393_v5   ;;  %400 = vperm.xlu0 %838, %v393_v5   ;;  %s886_s12 = scalar_lea.vmem %s885_s11, 512  ;;  %p887_p0 = scmp.lt.s32.totalorder %s1100_s25, %s885_s11 }
  0x31   : > { %746 = vmatpush3.bf16.msra.mxu1 %v846_v8  ;;  %p882_p11 = pnand %p881_p10, %p1045_p4  ;;  %p888_p1 = scmp.lt.s32.totalorder %s886_s12, %s880_s21 }
  0x32   : > { %747 = vmatprep.subr.bf16.mxu1 %v967_v2 }
  0x33   : > { %p883_p13 = pneg %p882_p11  ;;  %p889_p2 = por %p888_p1, %p887_p0 }
  0x34   : > { %841 = vset.pattern.permute.xlu1 %v969_v10  ;;  %840 = vset.pattern.permute.xlu0 %v969_v10 }
  0x35   : > { %418 = vperm.xlu1 %841, %v393_v5   ;;  %415 = vperm.xlu0 %840, %v392_v3   ;;  %p890_p3 = pnand %p889_p2, %p883_p13 }
  0x36   : > { %748 = vmatpush3.bf16.msra.mxu1 %v847_v11 }
  0x37   : > { %749 = vmatprep.subr.bf16.mxu1 %v967_v2 }
  0x39   : > { %842 = vset.pattern.permute.xlu1 %v970_v12  ;;  %843 = vset.pattern.permute.xlu0 %v970_v12 }
  0x3a   : > { %425 = vperm.xlu1 %842, %v392_v3   ;;  %428 = vperm.xlu0 %843, %v393_v5  }
  0x3b   : > { %750 = vmatpush3.bf16.msra.mxu1 %v848_v13 }
  0x3c   : > { %751 = vmatprep.subr.bf16.mxu1 %v967_v2 }
  0x3f   : > { %752 = vmatpush3.bf16.msra.mxu1 %v850_v14 }
  0x40   : > { %753 = vmatprep.subr.bf16.mxu1 %v967_v2 }
  0x43   : > { %754 = vmatpush3.bf16.msra.mxu1 %v852_v15 }
  0x44   : > { %755 = vmatprep.subr.bf16.mxu1 %v967_v2 }
  0x47   : > { %756 = vmatpush3.bf16.msra.mxu1 %v853_v16 }
  0xa7   : > { %v406_v17 = vpop.permute.xlu1 %405  ;;  %v398_v18 = vpop.permute.xlu0 %397 }
  0xa8   : > { %vm410_vm2 = vcmp.eq.s32.totalorder %v406_v17, %v395_v22  ;;  %vm402_vm3 = vcmp.eq.s32.totalorder %v398_v18, %v395_v22 }
  0xa9   : > { %vm412_vm7 = vmor %vm402_vm3, %vm410_vm2 }
  0xab   : > { %v409_v20 = vpop.permute.xlu1 %408  ;;  %v401_v21 = vpop.permute.xlu0 %400 }
  0xac   : > { %vm411_vm4 = vcmp.eq.s32.totalorder %v409_v20, %v395_v22  ;;  %vm403_vm5 = vcmp.eq.s32.totalorder %v401_v21, %v395_v22 }
  0xad   : > { %vm413_vm9 = vmor %vm403_vm5, %vm411_vm4 }
  0xb0   : > { %v419_v23 = vpop.permute.xlu1 %418  ;;  %v416_v24 = vpop.permute.xlu0 %415 }
  0xb1   : > { %vm421_vm6 = vcmp.eq.s32.totalorder %v419_v23, %v395_v22  ;;  %vm420_vm8 = vcmp.eq.s32.totalorder %v416_v24, %v395_v22 }
  0xb2   : > { %vm423_vm10 = vmor %vm413_vm9, %vm421_vm6 }
  0xb3   : > { %vm422_vm11 = vmor %vm412_vm7, %vm420_vm8 }
  0xb5   : > { %v426_v25 = vpop.permute.xlu1 %425  ;;  %v429_v26 = vpop.permute.xlu0 %428 }
  0xb6   : > { %vm430_vm12 = vcmp.eq.s32.totalorder %v426_v25, %v395_v22  ;;  %vm431_vm13 = vcmp.eq.s32.totalorder %v429_v26, %v395_v22 }
  0xb7   : > { %vm432_vm14 = vmor %vm422_vm11, %vm430_vm12 }
  0xb8   : > { %vm433_vm15 = vmor %vm423_vm10, %vm431_vm13 }
  0xb9   : > { %vm714_vm0 = vmpackc.low %vm433_vm15, %vm432_vm14 }
  0xba   : > { %758 = vmatmul.mubr.msk.bf16.vlgmr.msra.gmra.mxu1 %vm714_vm0, %v971_v27 }
  0xed   : > { %v383_v28 = vpop.f32.mrf.mxu0 }
  0xee   : > { %v390_v33 = vadd.f32 %v383_v28, %v328_v32 }
  0xef   : > { %v739_v29 = vpop.f32.mrf.mxu0 }
  0xf1   : > { %v386_v30 = vpop.f32.mrf.mxu0 }
  0xf2   : > { %v391_v38 = vadd.f32 %v386_v30, %v329_v34 }
  0xf3   : > { %v740_v31 = vpop.f32.mrf.mxu0 }
 0x17a   : > { %v537_v35 = vpop.f32.mrf.mxu1 }
 0x17b   : > { %v544_v36 = vadd.f32 %v537_v35, %v390_v33 }
 0x17c   : > { %v759_v37 = vpop.f32.mrf.mxu1 }
 0x17d   : > { %546 = vst [vmem:[%s299_s24] sm:$0xff] %v544_v36 }
 0x17e   : > { %v540_v39 = vpop.f32.mrf.mxu1 }
 0x17f   : > { %v545_v40 = vadd.f32 %v540_v39, %v391_v38 }
 0x180   : > { %v760_v41 = vpop.f32.mrf.mxu1 }
 0x181   : > { %547 = vst [vmem:[%s299_s24 + $0x8] sm:$0xff] %v545_v40 }
 0x182   : > { %893 = shalt.err (!%p890_p3)
}
 0x183   : > { %s894_s13 = scalar_lea.hbm %s1105_s8, 256  ;;  %s898_s16 = scalar_lea.hbm %s1157_s5, 512 }
 0x184   : > { %p895_p5 = scmp.ne.s32.totalorder %s1105_s8, %s894_s13  ;;  %p899_p9 = scmp.lt.s32.totalorder %s1105_s8, %s1157_s5 }
 0x185   : > { %p900_p12 = scmp.lt.s32.totalorder %s898_s16, %s894_s13 }
 0x186   : > { %p896_p6 = pnand %p895_p5, %p1045_p4 }
 0x187   : > { %p901_p10 = por %p900_p12, %p899_p9 }
 0x188   : > { %p897_p7 = pneg %p896_p6 }
 0x18a   : > { %p902_p11 = pnand %p901_p10, %p897_p7 }
 0x18c   : > { %905 = shalt.err (!%p902_p11)
}
 0x18d   : > { %s973_s27 = smov 128   ;;  %s974_s29 = smov 8  }
 0x18e   : > { %765 = dma.vmem_to_hbm [thread:$0]  (%p1045_p4), %s1100_s25, 256, %s1105_s8, %s1107_s9, %s973_s27, %s973_s27, %s974_s29  }
 0x18f PF: > { %p777_p13 = scmp.ge.s32.totalorder %s960_s23, 2  ;;  %s579_s7 = sand.u32 1, %s940_s18  }
 0x190   : > { %s580_s21 = scalar_lea.sflag [#allocation4], %s579_s7 }
 0x191   : > { %p772_p0 = pnand %p777_p13, %p1052_p8 }
 0x193   : > { %p773_p1 = pneg %p772_p0 }
 0x195   : > { %935 = dma.done.wait (%p773_p1), %s580_s21, 256  }
 0x196   : > { %937 = vsyncadd (%p773_p1), %s580_s21, 4294967040  ;;  %s19_s23 = sadd.s32 1, %s960_s23   ;;  %s1162_s18 = smov %s944_s19 }
 0x197   : > { %p16_p2 = scmp.ge.s32.totalorder %s19_s23, 4   ;;  %s1163_s19 = smov %s948_s20 }
 0x198   : > { %s1164_s20 = smov %s1058_s6  ;;  %s1165_s21 = smov %s956_s22 }
 0x199   : > { %s1166_s22 = smov %s1168_s26  ;;  %18 = sbr.rel (!%p16_p2) target bundleno = 5 (0x5), region = 86 }
 0x19e   :  { %585 = vsyncpa [#allocation3], 1 }
 0x19f   :  { %587 = vsyncpa [#allocation3 + $0x1], 1 }
 0x1a0   :  { %588 = vsyncpa [#allocation4], 1 }
 0x1a1   :  { %590 = vsyncpa [#allocation4 + $0x1], 1 }

</bundles_post_ra>
